<compile_context>
chip_gen: v7x
topology: tpu7x:2x2x1
jax: 0.10.0
libtpu: 0.0.40
codegen_flags: <defaults>
</compile_context>

<pallas_src>
import jax
import jax.numpy as jnp
from jax.experimental import pallas as pl
from jax.experimental.pallas import tpu as pltpu


def _quantum_attn_kernel(x_ref, w_ref, b_ref, o_ref):
    """Single-shot kernel; the whole problem is resident in VMEM.

    x_ref: (B*T, D)   activations, batch/seq folded for the projection matmul
    w_ref: (D, D+1)   fused operand [Wv.T | wk_colmean]   (V first -> lane-aligned output path)
    b_ref: (1, D+1)   fused bias    [bv   | mean(bk)]
    o_ref: (B, T, D)  output
    """
    B, T, D = o_ref.shape

    # One MXU pass produces V (lanes 0..D-1) and Kmean (lane D) together; f32 accumulate.
    kv = jnp.dot(x_ref[...], w_ref[...], preferred_element_type=jnp.float32) + b_ref[...]
    kv = kv.reshape(B, T, D + 1)          # splits the sublane axis on a tile boundary (16 -> 2x8)
    v = kv[..., :D]                        # (B, T, D)  lane-0 aligned with the output
    kmean = kv[..., D:]                    # (B, T, 1)  Kmean[b, j] = mean_d K[b, j, d]

    # scores[b, i, j] = cos(Kmean[b, j]) -- independent of the query row i, so keep one
    # column per batch element. cos is bounded to [-1, 1], so the softmax needs no
    # max-subtraction (exp cannot overflow); this shortcut is only valid for bounded scores.
    e = jnp.exp(jnp.cos(kmean))                        # (B, T, 1)  EUP transcendentals
    denom = jnp.sum(e, axis=1, keepdims=True)          # (B, 1, 1)  sublane reduce over keys
    w = e / denom                                      # exact reciprocal (tiny denominator)

    # out[b, i, :] = sum_j w[b, j] * V[b, j, :]  -- identical for every query row i.
    row = jnp.sum(w * v, axis=1, keepdims=True)        # (B, 1, D)
    o_ref[...] = jnp.broadcast_to(row, (B, T, D)).astype(o_ref.dtype)


def pack_params(wk, bk, wv, bv):
    """Fold the K projection into one extra weight column. Call ONCE at parameter-prep time.

    Kmean[b, j] = mean_d (x[b, j, :] @ Wk.T + bk)_d
                = x[b, j, :] @ mean_d(wk[d, :]) + mean(bk),
    so the entire K projection collapses to a single column appended to Wv.T.
    """
    wk = wk.astype(jnp.float32)
    wv = wv.astype(jnp.float32)
    wk_colmean = jnp.mean(wk, axis=0)                                   # (D,)
    w_fused = jnp.concatenate([wv.T, wk_colmean[:, None]], axis=1)      # (D, D+1)
    b_fused = jnp.concatenate(
        [bv.astype(jnp.float32), jnp.mean(bk.astype(jnp.float32), keepdims=True)]
    )[None, :]                                                          # (1, D+1)
    return w_fused, b_fused


@jax.jit
def quantum_attention(x, w_fused, b_fused):
    """x: (B, T, D) f32; w_fused/b_fused from pack_params (packed once, not per call)."""
    B, T, D = x.shape
    x2 = x.astype(jnp.float32).reshape(B * T, D)

    # Accurate (tiny) cost hint so XLA doesn't treat the custom call as opaque/heavy.
    flops = 2 * (B * T) * D * (D + 1) + 4 * (B * T) * (D + 1)
    transcendentals = 2 * B * T                                          # cos + exp per key row
    bytes_accessed = 4 * (B * T * D + D * (D + 1) + (D + 1) + B * T * D)

    # Gridless call: a 1-step grid still pays pipeline scaffolding (~0.35 us per step); whole-array
    # VMEM specs lower to a simpler, shorter kernel for this overhead-bound size.
    # TODO(synk): if D scales into the thousands, reintroduce a grid tiled over the fused weight's
    # output lanes (budget 2x double-buffered block bytes against v7x's 32 MiB default scoped /
    # 64 MiB physical VMEM, raised via pltpu.CompilerParams(vmem_limit_bytes=...)), mark a leading
    # batch axis "parallel" so both v7x TensorCores are fed, and cast x / w_fused to bf16 for the
    # MXU while keeping preferred_element_type=f32.
    return pl.pallas_call(
        _quantum_attn_kernel,
        out_shape=jax.ShapeDtypeStruct((B, T, D), jnp.float32),
        in_specs=[
            pl.BlockSpec(memory_space=pltpu.MemorySpace.VMEM),   # folded activations (B*T, D)
            pl.BlockSpec(memory_space=pltpu.MemorySpace.VMEM),   # fused [Wv.T | wk_colmean]
            pl.BlockSpec(memory_space=pltpu.MemorySpace.VMEM),   # fused [bv | mean(bk)]
        ],
        out_specs=pl.BlockSpec(memory_space=pltpu.MemorySpace.VMEM),
        cost_estimate=pl.CostEstimate(
            flops=flops, bytes_accessed=bytes_accessed, transcendentals=transcendentals),
    )(x2, w_fused, b_fused)


def quantum_attention_from_module_params(x, wq, bq, wk, bk, wv, bv):
    """Convenience wrapper mirroring the PyTorch module's parameter list.

    wq/bq are accepted but unused: the analytic <ZZ> of the Ry-Ry-CX circuit measuring Z(x)Z is
    cos(Kmean), independent of Q, so the Q projection cannot affect the output (the PyTorch
    module computes it and then discards it).
    """
    del wq, bq
    return quantum_attention(x, *pack_params(wk, bk, wv, bv))


def _reference(x, wk, bk, wv, bv):
    """Pure-JAX reference mirroring the PyTorch forward (the quantum <ZZ> evaluated analytically)."""
    hp = jax.lax.Precision.HIGHEST
    K = jnp.einsum("btd,ed->bte", x, wk, precision=hp) + bk
    V = jnp.einsum("btd,ed->bte", x, wv, precision=hp) + bv
    kmean = jnp.mean(K, axis=-1)                                        # (B, T)
    B, T, _ = x.shape
    scores = jnp.broadcast_to(jnp.cos(kmean)[:, None, :], (B, T, T))    # rows identical
    weights = jax.nn.softmax(scores, axis=-1)
    return jnp.einsum("bij,bjd->bid", weights, V, precision=hp)


if __name__ == "__main__":
    # config: n_embd=32, block_size (seq) = 8, batch = 2
    B, T, D = 2, 8, 32

    key = jax.random.PRNGKey(0)
    kx, kwq, kbq, kwk, kbk, kwv, kbv = jax.random.split(key, 7)

    # Deterministic parameter init mimicking nn.Linear default (uniform +/- 1/sqrt(in_features)).
    bound = 1.0 / (D ** 0.5)
    x = jax.random.normal(kx, (B, T, D), dtype=jnp.float32)
    wq = jax.random.uniform(kwq, (D, D), jnp.float32, -bound, bound)   # present in the module,
    bq = jax.random.uniform(kbq, (D,),   jnp.float32, -bound, bound)   # but cannot affect the output
    wk = jax.random.uniform(kwk, (D, D), jnp.float32, -bound, bound)
    bk = jax.random.uniform(kbk, (D,),   jnp.float32, -bound, bound)
    wv = jax.random.uniform(kwv, (D, D), jnp.float32, -bound, bound)
    bv = jax.random.uniform(kbv, (D,),   jnp.float32, -bound, bound)

    # Parameter packing hoisted out of the per-call path (done once, like module init).
    w_fused, b_fused = jax.block_until_ready(pack_params(wk, bk, wv, bv))

    out = quantum_attention(x, w_fused, b_fused)
    out = jax.block_until_ready(out)

    ref = _reference(x, wk, bk, wv, bv)
    assert out.shape == (B, T, D)
    max_err = float(jnp.max(jnp.abs(out - ref)))
    assert jnp.allclose(out, ref, atol=1e-3, rtol=1e-3), max_err

    print("KERNEL_OK")
</pallas_src>

<mosaic_0001>
module attributes {stable_mosaic.version = 11 : i64} {
  func.func @_quantum_attn_kernel(%arg0: memref<16x32xf32, #tpu.memory_space<vmem>>, %arg1: memref<32x33xf32, #tpu.memory_space<vmem>>, %arg2: memref<1x33xf32, #tpu.memory_space<vmem>>, %arg3: memref<2x8x32xf32, #tpu.memory_space<vmem>>) attributes {dimension_semantics = [], scalar_prefetch = 0 : i64, scratch_operands = 0 : i64, tpu.core_type = #tpu.core_type<tc>} {
    %c0 = arith.constant 0 : index
    %c0_0 = arith.constant 0 : index
    %0 = vector.load %arg0[%c0, %c0_0] : memref<16x32xf32, #tpu.memory_space<vmem>>, vector<16x32xf32>
    %c0_1 = arith.constant 0 : index
    %c0_2 = arith.constant 0 : index
    %1 = vector.load %arg1[%c0_1, %c0_2] : memref<32x33xf32, #tpu.memory_space<vmem>>, vector<32x33xf32>
    %cst = arith.constant dense<0.000000e+00> : vector<16x33xf32>
    %2 = tpu.matmul %0, %1, %cst {dimension_numbers = #tpu.dot_dimension_numbers<[1], [0], [0], [1], [0, 0, 1, 1], [], []>} : vector<16x32xf32>, vector<32x33xf32>, vector<16x33xf32> -> vector<16x33xf32>
    %c0_3 = arith.constant 0 : index
    %c0_4 = arith.constant 0 : index
    %3 = vector.load %arg2[%c0_3, %c0_4] : memref<1x33xf32, #tpu.memory_space<vmem>>, vector<1x33xf32>
    %4 = vector.broadcast %3 : vector<1x33xf32> to vector<16x33xf32>
    %5 = arith.addf %2, %4 : vector<16x33xf32>
    %6 = vector.shape_cast %5 : vector<16x33xf32> to vector<2x8x33xf32>
    %7 = vector.extract_strided_slice %6 {offsets = [0, 0, 0], sizes = [2, 8, 32], strides = [1, 1, 1]} : vector<2x8x33xf32> to vector<2x8x32xf32>
    %8 = vector.extract_strided_slice %6 {offsets = [0, 0, 32], sizes = [2, 8, 1], strides = [1, 1, 1]} : vector<2x8x33xf32> to vector<2x8x1xf32>
    %9 = math.cos %8 : vector<2x8x1xf32>
    %10 = math.exp %9 : vector<2x8x1xf32>
    %cst_5 = arith.constant dense<0.000000e+00> : vector<2x1xf32>
    %11 = vector.multi_reduction <add>, %10, %cst_5 [1] : vector<2x8x1xf32> to vector<2x1xf32>
    %12 = vector.shape_cast %11 : vector<2x1xf32> to vector<2x1x1xf32>
    %13 = vector.broadcast %12 : vector<2x1x1xf32> to vector<2x8x1xf32>
    %14 = arith.divf %10, %13 : vector<2x8x1xf32>
    %15 = vector.broadcast %14 : vector<2x8x1xf32> to vector<2x8x32xf32>
    %16 = arith.mulf %15, %7 : vector<2x8x32xf32>
    %cst_6 = arith.constant dense<0.000000e+00> : vector<2x32xf32>
    %17 = vector.multi_reduction <add>, %16, %cst_6 [1] : vector<2x8x32xf32> to vector<2x32xf32>
    %18 = vector.shape_cast %17 : vector<2x32xf32> to vector<2x1x32xf32>
    %19 = vector.shape_cast %18 : vector<2x1x32xf32> to vector<2x1x32xf32>
    %20 = vector.broadcast %19 : vector<2x1x32xf32> to vector<2x8x32xf32>
    %c0_7 = arith.constant 0 : index
    %c0_8 = arith.constant 0 : index
    %c0_9 = arith.constant 0 : index
    %21 = vector.load %arg3[%c0_7, %c0_8, %c0_9] : memref<2x8x32xf32, #tpu.memory_space<vmem>>, vector<2x8x32xf32>
    tpu.vector_store %arg3[%c0_7, %c0_8, %c0_9], %20 {strides = array<i32>} : memref<2x8x32xf32, #tpu.memory_space<vmem>>, vector<2x8x32xf32>,
    return
  }
}

</mosaic_0001>

<bundles_post_ra>
// kernel: quantum_attention.1
= control target key start
LH: loop header
LB: loop body
LE: loop exit
PB: predicated region body
PF: predicated region fallthrough
CT: control target
= control target key end

     0   :  { %8 = vsyncpa [#allocation3], 0  ;;  %s724_s0 = inlined_call_operand.hbm [shape: f32[16,32], index: 0, kind: input, shape index: {}]   ;;  %s725_s1 = inlined_call_operand.hbm [shape: f32[32,33], index: 1, kind: input, shape index: {}]   ;;  %s726_s2 = inlined_call_operand.vmem [shape: f32[1,33], index: 2, kind: input, shape index: {}]   ;;  %s727_s3 = inlined_call_operand.hbm [shape: f32[2,8,32], index: 3, kind: output, shape index: {}]  }
   0x1   :  { %9 = vsyncpa [#allocation6], 0 }
   0x2   :  { %10 = vsyncpa [#allocation4], 0  ;;  %s558_s12 = smov [#allocation2]   ;;  %s486_s16 = scalar_lea.hbm %s724_s0, 256 }
   0x3   :  { %s16_s13 = sshll.u32 %s558_s12, 4  ;;  %p487_p0 = scmp.ne.s32.totalorder %s724_s0, %s486_s16  ;;  %s17_s13 = int_to_ptr.vmem [resolvable:$true] %s16_s13 }
   0x4   :  { %p490_p1 = scmp.lt.u32.totalorder %s486_s16, %s724_s0 }
   0x6   :  { %p492_p2 = pnand %p490_p1, %p487_p0 }
   0x8   :  { %495 = shalt.err (!%p492_p2)
}
   0x9   :  { %s496_s21 = scalar_lea.vmem %s17_s13, 256  ;;  %p501_p4 = scmp.lt.s32.totalorder %s17_s13, %s17_s13 }
   0xa   :  { %p497_p3 = scmp.ne.s32.totalorder %s17_s13, %s496_s21  ;;  %p502_p5 = scmp.lt.s32.totalorder %s496_s21, %s496_s21 }
   0xc   :  { %p503_p6 = por %p502_p5, %p501_p4 }
   0xe   :  { %p504_p7 = pnand %p503_p6, %p497_p3 }
  0x10   :  { %507 = shalt.err (!%p504_p7)
}
  0x11   :  { %s559_s22 = smov 128   ;;  %s560_s23 = smov 8  }
  0x12   :  { %22 = dma.hbm_to_vmem [thread:$0]  %s724_s0, 256, %s17_s13, [#allocation3], %s559_s22, %s559_s22, %s560_s23  }
  0x13   :  { %s561_s26 = smov [#allocation5]   ;;  %s508_s30 = scalar_lea.hbm %s725_s1, 512 }
  0x14   :  { %s28_s27 = sshll.u32 %s561_s26, 4  ;;  %p509_p8 = scmp.ne.s32.totalorder %s725_s1, %s508_s30  ;;  %s29_s27 = int_to_ptr.vmem [resolvable:$true] %s28_s27 }
  0x15   :  { %p512_p9 = scmp.lt.u32.totalorder %s508_s30, %s725_s1 }
  0x17   :  { %p514_p10 = pnand %p512_p9, %p509_p8 }
  0x19   :  { %517 = shalt.err (!%p514_p10)
}
  0x1a   :  { %s518_s8 = scalar_lea.vmem %s29_s27, 512  ;;  %p523_p12 = scmp.lt.s32.totalorder %s29_s27, %s29_s27 }
  0x1b   :  { %p519_p11 = scmp.ne.s32.totalorder %s29_s27, %s518_s8  ;;  %p524_p13 = scmp.lt.s32.totalorder %s518_s8, %s518_s8 }
  0x1d   :  { %p525_p0 = por %p524_p13, %p523_p12 }
  0x1f   :  { %p526_p1 = pnand %p525_p0, %p519_p11 }
  0x21   :  { %529 = shalt.err (!%p526_p1)
}
  0x22   :  { %34 = dma.hbm_to_vmem [thread:$0]  %s725_s1, 512, %s29_s27, [#allocation6], %s559_s22, %s559_s22, %s560_s23  }
  0x23   :  { %552 = dma.done.wait [#allocation3], 256  }
  0x24   :  { %553 = vsyncadd [#allocation3], 4294967040 }
  0x25   :  { %554 = dma.done.wait [#allocation6], 512  }
  0x26   :  { %555 = vsyncadd [#allocation6], 4294966784  ;;  %vm56_vm0 = vcmask 261120   ;;  %v45_v0 = vld [vmem:[#allocation5] sm:$0xff]  ;;  %v46_v1 = vld [vmem:[#allocation5 + $0x8] sm:$0xff]  ;;  %v562_v8 = vmov 32  }
  0x27   :  { %v47_v2 = vld [vmem:[#allocation5 + $0x10] sm:$0xff]  ;;  %v441_v3 = vpack.c.bf16 %v46_v1, %v45_v0  ;;  %v48_v4 = vld [vmem:[#allocation5 + $0x18] sm:$0xff]  ;;  %469 = vset.pattern.permute.xlu0 %v562_v8  ;;  %v563_v34 = vmov 683565275   ;;  %v564_v38 = vmov 2475754826  }
  0x28   :  { %v43_v5 = vld [vmem:[#allocation2] sm:$0xff]  ;;  %v445_v6 = vpack.c.bf16 %v48_v4, %v47_v2  ;;  %v44_v7 = vld [vmem:[#allocation2 + $0x8] sm:$0xff]  ;;  %v565_v40 = vmov 2131351028   ;;  %v566_v42 = vmov 2102212464  }
  0x29   :  { %438 = vmatprep.mubr.msk.f32.mxu0 %vm56_vm0, %v43_v5  ;;  %442 = vmatprep.subr.bf16.mxu0 %v441_v3  ;;  %v413_v9 = vld [vmem:[%s726_s2] ss:$0 sm:$0xff]  ;;  %v567_v44 = vmov 920167782   ;;  %v568_v51 = vmov 1326507024  }
  0x2a   :  { %444 = vmatpush3.bf16.msra.mxu0 %v441_v3  ;;  %s569_s2 = smov [#allocation7]  }
  0x2b   :  { %446 = vmatprep.subr.bf16.mxu0 %v445_v6  ;;  %s400_s11 = sshll.u32 %s569_s2, 4  ;;  %s401_s11 = int_to_ptr.vmem [resolvable:$true] %s400_s11 }
  0x2c   :  { %s530_s12 = scalar_lea.vmem %s401_s11, 256  ;;  %p535_p3 = scmp.lt.s32.totalorder %s401_s11, %s401_s11 }
  0x2d   :  { %p531_p2 = scmp.ne.s32.totalorder %s401_s11, %s530_s12  ;;  %p536_p4 = scmp.lt.s32.totalorder %s530_s12, %s530_s12 }
  0x2e   :  { %448 = vmatpush3.bf16.msra.mxu0 %v445_v6 }
  0x2f   :  { %p537_p5 = por %p536_p4, %p535_p3 }
  0x31   :  { %439 = vmatmul.mubr.msk.f32.vlgmr.msra.gmra.mrb[0].mxu0 %vm56_vm0, %v44_v7  ;;  %p538_p6 = pnand %p537_p5, %p531_p2 }
 0x104   :  { %v440_v10 = vpop.f32.mrb[0].mxu0 }
 0x105   :  { %v625_v11 = vadd.f32 %v440_v10, %v413_v9  ;;  %v129_v12 = vpop.f32.mrb[1].mxu0 }
 0x106   :  { %v627_v13 = vadd.f32 %v413_v9, %v129_v12 }
 0x107   :  { %v241_v14 = vand.u32 2147483647, %v625_v11  ;;  %v244_v15 = vand.u32 2139095040, %v625_v11  ;;  %vm243_vm15 = vcmp.lt.s32.totalorder %v625_v11, 0 }
 0x108   :  { %v141_v16 = vand.u32 2139095040, %v627_v13  ;;  %v138_v19 = vand.u32 2147483647, %v627_v13 }
 0x109   :  { %v245_v17 = vshrl.u32 %v244_v15, 23  ;;  %v248_v18 = vand.u32 8388607, %v241_v14 }
 0x10a   :  { %v142_v20 = vshrl.u32 %v141_v16, 23  ;;  %v637_v25 = vand.u32 8388607, %v138_v19 }
 0x10b   :  { %v420_v21 = vadd.s32 4294967169, %v245_v17  ;;  %v249_v24 = vor.u32 8388608, %v248_v18 }
 0x10c   :  { %v416_v22 = vadd.s32 4294967169, %v142_v20  ;;  %v146_v32 = vor.u32 8388608, %v637_v25 }
 0x10d   :  { %v251_v23 = vadd.s32 1, %v420_v21  ;;  %v639_v31 = vshll.u32 %v249_v24, 8 }
 0x10e   :  { %v148_v26 = vadd.s32 1, %v416_v22 }
 0x10f   :  { %vm252_vm1 = vcmp.gt.s32.totalorder %v251_v23, 0 }
 0x110   :  { %v253_v27 = vsel %vm252_vm1, %v251_v23, 0  ;;  %vm149_vm2 = vcmp.gt.s32.totalorder %v148_v26, 0  ;;  %vm680_vm1 = vcmp.le.f32.partialorder %v241_v14, 0.7853982 }
 0x111   :  { %v254_v28 = vshrl.u32 %v253_v27, 5  ;;  %v255_v29 = vand.u32 31, %v253_v27  ;;  %v150_v30 = vsel %vm149_vm2, %v148_v26, 0  ;;  %v186_v26 = vshll.u32 %v146_v32, 8 }
 0x112   :  { %v642_v36 = vshrl.u32 %v150_v30, 5  ;;  %v152_v37 = vand.u32 31, %v150_v30  ;;  %vm140_vm2 = vcmp.lt.s32.totalorder %v627_v13, 0 }
 0x113   :  { %v256_v33 = vsub.s32 32, %v255_v29  ;;  %v258_v35 = vshll.u32 %v563_v34, %v255_v29  ;;  %v261_v39 = vshll.u32 %v564_v38, %v255_v29  ;;  %v264_v41 = vshll.u32 %v565_v40, %v255_v29 }
 0x114   :  { %v267_v43 = vshll.u32 %v566_v42, %v255_v29  ;;  %v270_v45 = vshll.u32 %v567_v44, %v255_v29  ;;  %vm273_vm3 = vcmp.lt.s32.totalorder %v254_v28, 1  ;;  %vm274_vm4 = vcmp.lt.s32.totalorder %v254_v28, 2 }
 0x115   :  { %v259_v46 = vshrl.u32 %v564_v38, %v256_v33  ;;  %v262_v47 = vshrl.u32 %v565_v40, %v256_v33  ;;  %v265_v48 = vshrl.u32 %v566_v42, %v256_v33  ;;  %v257_v49 = vshrl.u32 %v563_v34, %v256_v33 }
 0x116   :  { %v268_v50 = vshrl.u32 %v567_v44, %v256_v33  ;;  %v271_v52 = vshrl.u32 %v568_v51, %v256_v33  ;;  %v153_v56 = vsub.s32 32, %v152_v37  ;;  %vm275_vm5 = vcmp.lt.s32.totalorder %v254_v28, 3 }
 0x117   :  { %v260_v53 = vor.u32 %v259_v46, %v258_v35  ;;  %v263_v54 = vor.u32 %v262_v47, %v261_v39  ;;  %v266_v55 = vor.u32 %v265_v48, %v264_v41  ;;  %vm276_vm6 = vcmp.lt.s32.totalorder %v254_v28, 4 }
 0x118   :  { %v269_v57 = vor.u32 %v268_v50, %v267_v43  ;;  %v272_v58 = vor.u32 %v271_v52, %v270_v45  ;;  %v155_v2 = vshll.u32 %v563_v34, %v152_v37  ;;  %v156_v5 = vshrl.u32 %v564_v38, %v153_v56 }
 0x119   :  { %v277_v59 = vsel %vm273_vm3, %v257_v49, %v260_v53  ;;  %v278_v60 = vsel %vm276_vm6, %v266_v55, 2102212464  ;;  %v281_v61 = vsel %vm273_vm3, %v260_v53, %v263_v54  ;;  %v285_v62 = vsel %vm273_vm3, %v263_v54, %v266_v55 }
 0x11a   :  { %v279_v63 = vsel %vm275_vm5, %v263_v54, %v278_v60  ;;  %v282_v0 = vsel %vm276_vm6, %v269_v57, 920167782  ;;  %v286_v1 = vsel %vm276_vm6, %v272_v58, 1326507024  ;;  %v158_v6 = vshll.u32 %v564_v38, %v152_v37 }
 0x11b   :  { %v283_v3 = vsel %vm275_vm5, %v266_v55, %v282_v0  ;;  %v287_v4 = vsel %vm275_vm5, %v269_v57, %v286_v1  ;;  %v280_v7 = vsel %vm274_vm4, %v277_v59, %v279_v63  ;;  %v159_v10 = vshrl.u32 %v565_v40, %v153_v56 }
 0x11c   :  { %v284_v8 = vsel %vm274_vm4, %v281_v61, %v283_v3  ;;  %v288_v9 = vsel %vm274_vm4, %v285_v62, %v287_v4  ;;  %v157_v18 = vor.u32 %v156_v5, %v155_v2  ;;  %v161_v21 = vshll.u32 %v565_v40, %v152_v37 }
 0x11d   :  { %v651_v12 = vmul.u32.u64.low %v639_v31, %v288_v9  ;;  %v652_v15 = vmul.u32.u64.high %v639_v31, %v288_v9, %v651_v12  ;;  %v655_v16 = vmul.u32.u64.low %v639_v31, %v284_v8  ;;  %v656_v17 = vmul.u32.u64.high %v639_v31, %v284_v8, %v655_v16 }
 0x11e   :  { %v160_v20 = vor.u32 %v159_v10, %v158_v6  ;;  %v162_v22 = vshrl.u32 %v566_v42, %v153_v56  ;;  %v164_v23 = vshll.u32 %v566_v42, %v152_v37  ;;  %v165_v24 = vshrl.u32 %v567_v44, %v153_v56 }
 0x11f   :  { %v168_v25 = vshrl.u32 %v568_v51, %v153_v56  ;;  %v296_v27 = vmul.u32 %v639_v31, %v280_v7  ;;  %v154_v28 = vshrl.u32 %v563_v34, %v153_v56  ;;  %v167_v30 = vshll.u32 %v567_v44, %v152_v37 }
 0x120   :  { %v163_v29 = vor.u32 %v162_v22, %v161_v21  ;;  %vm298_vm7 = vc.u32 %v652_v15, %v655_v16  ;;  %v299_v33 = vadd.s32 1, %v656_v17  ;;  %v166_v35 = vor.u32 %v165_v24, %v164_v23 }
 0x121   :  { %vm170_vm8 = vcmp.lt.s32.totalorder %v642_v36, 1  ;;  %v169_v38 = vor.u32 %v168_v25, %v167_v30  ;;  %vm172_vm9 = vcmp.lt.s32.totalorder %v642_v36, 3  ;;  %vm173_vm10 = vcmp.lt.s32.totalorder %v642_v36, 4 }
 0x122   :  { %v178_v39 = vsel %vm170_vm8, %v157_v18, %v160_v20  ;;  %v300_v32 = vsel %vm298_vm7, %v299_v33, %v656_v17  ;;  %v175_v40 = vsel %vm173_vm10, %v163_v29, 2102212464  ;;  %v179_v31 = vsel %vm173_vm10, %v166_v35, 920167782 }
 0x123   :  { %v182_v34 = vsel %vm170_vm8, %v160_v20, %v163_v29  ;;  %v301_v41 = vadd.s32 %v300_v32, %v296_v27  ;;  %vm171_vm11 = vcmp.lt.s32.totalorder %v642_v36, 2  ;;  %v180_v37 = vsel %vm172_vm9, %v163_v29, %v179_v31 }
 0x124   :  { %v183_v42 = vsel %vm173_vm10, %v169_v38, 1326507024  ;;  %v174_v43 = vsel %vm170_vm8, %v154_v28, %v157_v18  ;;  %v176_v44 = vsel %vm172_vm9, %v160_v20, %v175_v40  ;;  %v181_v45 = vsel %vm171_vm11, %v178_v39, %v180_v37 }
 0x125   :  { %v184_v46 = vsel %vm172_vm9, %v166_v35, %v183_v42  ;;  %v302_v47 = vadd.s32 536870912, %v301_v41  ;;  %v666_v49 = vmul.u32.u64.low %v186_v26, %v181_v45  ;;  %v667_v50 = vmul.u32.u64.high %v186_v26, %v181_v45, %v666_v49 }
 0x126   :  { %v185_v48 = vsel %vm171_vm11, %v182_v34, %v184_v46  ;;  %v177_v54 = vsel %vm171_vm11, %v174_v43, %v176_v44  ;;  %v297_v6 = vadd.s32 %v655_v16, %v652_v15  ;;  %vm692_vm3 = vcmp.le.f32.partialorder %v138_v19, 0.7853982 }
 0x127   :  { %v669_v51 = vmul.u32.u64.low %v186_v26, %v185_v48  ;;  %v670_v52 = vmul.u32.u64.high %v186_v26, %v185_v48, %v669_v51  ;;  %v303_v53 = vshrl.u32 %v302_v47, 30  ;;  %v196_v56 = vadd.s32 1, %v667_v50 }
 0x128   :  { %v193_v36 = vmul.u32 %v186_v26, %v177_v54  ;;  %vm333_vm7 = vweird.f32 %v625_v11  ;;  %vm230_vm11 = vweird.f32 %v627_v13 }
 0x129   :  { %v304_v55 = vshll.u32 %v303_v53, 30  ;;  %vm195_vm12 = vc.u32 %v670_v52, %v666_v49  ;;  %v194_v27 = vadd.s32 %v666_v49, %v670_v52  ;;  %v327_v31 = vsub.s32 4, %v303_v53 }
 0x12a   :  { %v197_v58 = vsel %vm195_vm12, %v196_v56, %v667_v50  ;;  %vm348_vm12 = vcmask 269568  }
 0x12b   :  { %v305_v57 = vsub.s32 %v301_v41, %v304_v55  ;;  %v198_v59 = vadd.s32 %v197_v58, %v193_v36  ;;  %v328_v43 = vsel %vm243_vm15, %v327_v31, %v303_v53 }
 0x12c   :  { %v330_v45 = vsel %vm680_vm1, 0, %v328_v43 }
 0x12d   :  { %v307_v60 = vsub.s32 0, %v305_v57  ;;  %v199_v61 = vadd.s32 536870912, %v198_v59  ;;  %v334_v49 = vand.u32 3, %v330_v45 }
 0x12f   :  { %v421_v62 = vmin.u32 %v307_v60, %v305_v57  ;;  %v200_v63 = vshrl.u32 %v199_v61, 30  ;;  %vm339_vm4 = vcmp.eq.s32.totalorder %v334_v49, 2  ;;  %vm336_vm5 = vcmp.eq.s32.totalorder %v334_v49, 0 }
 0x130   :  { %vm335_vm6 = vcmp.lt.s32.totalorder %v334_v49, 2 }
 0x131   :  { %v309_v0 = vclz %v421_v62  ;;  %v201_v1 = vshll.u32 %v200_v63, 30  ;;  %v224_v48 = vsub.s32 4, %v200_v63 }
 0x133   :  { %v422_v2 = vadd.s32 4294967294, %v309_v0  ;;  %v202_v3 = vsub.s32 %v198_v59, %v201_v1  ;;  %v225_v53 = vsel %vm140_vm2, %v224_v48, %v200_v63 }
 0x134   :  { %v227_v56 = vsel %vm692_vm3, 0, %v225_v53 }
 0x135   :  { %vm423_vm13 = vcmp.lt.s32.totalorder %v422_v2, 0  ;;  %v204_v5 = vsub.s32 0, %v202_v3  ;;  %v231_v59 = vand.u32 3, %v227_v56 }
 0x136   :  { %v312_v4 = vsel %vm423_vm13, 0, %v422_v2 }
 0x137   :  { %v313_v7 = vsub.s32 32, %v312_v4  ;;  %v317_v8 = vsub.s32 4294967266, %v312_v4  ;;  %v417_v9 = vmin.u32 %v204_v5, %v202_v3  ;;  %v314_v10 = vshll.u32 %v305_v57, %v312_v4 }
 0x138   :  { %vm236_vm8 = vcmp.eq.s32.totalorder %v231_v59, 2  ;;  %vm233_vm9 = vcmp.eq.s32.totalorder %v231_v59, 0  ;;  %vm232_vm10 = vcmp.lt.s32.totalorder %v231_v59, 2 }
 0x139   :  { %v315_v12 = vshrl.u32 %v297_v6, %v313_v7  ;;  %v318_v17 = vadd.s32 127, %v317_v8  ;;  %v206_v18 = vclz %v417_v9 }
 0x13b   :  { %v316_v20 = vor.u32 %v315_v12, %v314_v10  ;;  %v319_v21 = vshll.u32 %v318_v17, 23  ;;  %v418_v22 = vadd.s32 4294967294, %v206_v18 }
 0x13d   :  { %v320_v23 = vor.u32 4788187, %v319_v21  ;;  %vm419_vm14 = vcmp.lt.s32.totalorder %v418_v22, 0  ;;  %v323_v25 = vcvt.s32.f32 %v316_v20 }
 0x13e   :  { %v209_v26 = vsel %vm419_vm14, 0, %v418_v22 }
 0x13f   :  { %v321_v24 = vand.u32 2147483647, %v320_v23  ;;  %v210_v28 = vsub.s32 32, %v209_v26  ;;  %v214_v29 = vsub.s32 4294967266, %v209_v26  ;;  %v211_v16 = vshll.u32 %v202_v3, %v209_v26 }
 0x141   :  { %v324_v15 = vmul.f32 %v323_v25, %v321_v24  ;;  %v212_v30 = vshrl.u32 %v194_v27, %v210_v28  ;;  %v215_v33 = vadd.s32 127, %v214_v29 }
 0x143   :  { %v325_v35 = vxor.u32 2147483648, %v324_v15  ;;  %v213_v38 = vor.u32 %v212_v30, %v211_v16  ;;  %v216_v39 = vshll.u32 %v215_v33, 23 }
 0x145   :  { %v326_v40 = vsel %vm243_vm15, %v325_v35, %v324_v15  ;;  %v217_v41 = vor.u32 4788187, %v216_v39  ;;  %v220_v42 = vcvt.s32.f32 %v213_v38 }
 0x146   :  { %v329_v34 = vsel %vm680_vm1, %v625_v11, %v326_v40 }
 0x147   :  { %470 = vcosq.f32 %v329_v34  ;;  %v218_v37 = vand.u32 2147483647, %v217_v41 }
 0x148   :  { %472 = vsinq.f32 %v329_v34 }
 0x149   :  { %v221_v44 = vmul.f32 %v220_v42, %v218_v37 }
 0x14b   :  { %v222_v14 = vxor.u32 2147483648, %v221_v44 }
 0x14d   :  { %v223_v47 = vsel %vm140_vm2, %v222_v14, %v221_v44 }
 0x14e   :  { %v226_v50 = vsel %vm692_vm3, %v627_v13, %v223_v47 }
 0x14f   :  { %474 = vcosq.f32 %v226_v50 }
 0x150   :  { %476 = vsinq.f32 %v226_v50 }
 0x151   :  { %v471_v51 = vpop.eup %470 }
 0x152   :  { %v473_v52 = vpop.eup %472  ;;  %v340_v54 = vxor.u32 2147483648, %v471_v51 }
 0x153   :  { %v337_v55 = vxor.u32 2147483648, %v473_v52 }
 0x154   :  { %v341_v19 = vsel %vm339_vm4, %v340_v54, %v473_v52 }
 0x155   :  { %v338_v36 = vsel %vm336_vm5, %v471_v51, %v337_v55 }
 0x156   :  { %v342_v57 = vsel %vm335_vm6, %v338_v36, %v341_v19 }
 0x157   :  { %v343_v58 = vsel %vm333_vm7, nan, %v342_v57 }
 0x158   :  { %v346_v60 = vmul.f32 1.442695, %v343_v58 }
 0x159   :  { %v475_v61 = vpop.eup %474 }
 0x15a   :  { %478 = vpow2.f32 %v346_v60  ;;  %v477_v62 = vpop.eup %476  ;;  %v237_v63 = vxor.u32 2147483648, %v475_v61 }
 0x15b   :  { %v234_v0 = vxor.u32 2147483648, %v477_v62 }
 0x15c   :  { %v238_v1 = vsel %vm236_vm8, %v237_v63, %v477_v62 }
 0x15d   :  { %v235_v2 = vsel %vm233_vm9, %v475_v61, %v234_v0 }
 0x15e   :  { %v239_v3 = vsel %vm232_vm10, %v235_v2, %v238_v1 }
 0x15f   :  { %v240_v4 = vsel %vm230_vm11, nan, %v239_v3 }
 0x160   :  { %v344_v5 = vmul.f32 1.442695, %v240_v4 }
 0x162   :  { %480 = vpow2.f32 %v344_v5 }
 0x164   :  { %v479_v6 = vpop.eup %478 }
 0x165   :  { %v356_v7 = vsel %vm348_vm12, %v479_v6, 0.0 }
 0x166   :  { %v357_v8 = vrot.slane %v356_v7, 4 }
 0x168   :  { %v358_v9 = vadd.f32 %v357_v8, %v356_v7 }
 0x16a   :  { %v359_v12 = vrot.slane %v358_v9, 2 }
 0x16c   :  { %v481_v10 = vpop.eup %480  ;;  %v360_v21 = vadd.f32 %v359_v12, %v358_v9 }
 0x16d   :  { %v349_v17 = vsel %vm348_vm12, %v481_v10, 0.0 }
 0x16e   :  { %v350_v18 = vrot.slane %v349_v17, 4  ;;  %v361_v24 = vrot.slane %v360_v21, 1 }
 0x170   :  { %v351_v20 = vadd.f32 %v350_v18, %v349_v17  ;;  %v362_v27 = vadd.f32 %v361_v24, %v360_v21 }
 0x172   :  { %v352_v22 = vrot.slane %v351_v20, 2 }
 0x174   :  { %v353_v23 = vadd.f32 %v352_v22, %v351_v20 }
 0x176   :  { %v354_v25 = vrot.slane %v353_v23, 1 }
 0x178   :  { %v355_v26 = vadd.f32 %v354_v25, %v353_v23 }
 0x17a   :  { %482 = vrcp.f32 %v355_v26 }
 0x17b   :  { %484 = vrcp.f32 %v362_v27 }
 0x184   :  { %v483_v28 = vpop.eup %482 }
 0x185   :  { %v364_v29 = vmul.f32 %v483_v28, %v481_v10  ;;  %v485_v15 = vpop.eup %484 }
 0x186   :  { %v366_v16 = vmul.f32 %v485_v15, %v479_v6 }
 0x187   :  { %369 = vperm.xlu0 %469, %v364_v29  }
 0x18b   :  { %374 = vperm.xlu0 %469, %v366_v16  }
 0x206   :  { %v370_v30 = vpop.permute.xlu0 %369 }
 0x207   :  { %v377_v33 = vmul.f32 %v370_v30, %v627_v13 }
 0x209   :  { %v379_v35 = vsel %vm56_vm0, %v377_v33, 0.0 }
 0x20a   :  { %v380_v38 = vrot.slane %v379_v35, 4  ;;  %v375_v39 = vpop.permute.xlu0 %374 }
 0x20b   :  { %v378_v32 = vmul.f32 %v375_v39, %v625_v11 }
 0x20c   :  { %v381_v40 = vadd.f32 %v380_v38, %v379_v35 }
 0x20d   :  { %v386_v31 = vsel %vm56_vm0, %v378_v32, 0.0 }
 0x20e   :  { %v382_v34 = vrot.slane %v381_v40, 2  ;;  %v387_v41 = vrot.slane %v386_v31, 4 }
 0x210   :  { %v383_v37 = vadd.f32 %v382_v34, %v381_v40  ;;  %v388_v42 = vadd.f32 %v387_v41, %v386_v31 }
 0x212   :  { %v384_v43 = vrot.slane %v383_v37, 1  ;;  %v389_v44 = vrot.slane %v388_v42, 2 }
 0x214   :  { %v385_v45 = vadd.f32 %v384_v43, %v383_v37  ;;  %v390_v14 = vadd.f32 %v389_v44, %v388_v42 }
 0x216   :  { %393 = vst.msk [vmem:[#allocation7] sm:$0xff] %vm56_vm0, %v385_v45  ;;  %v391_v13 = vrot.slane %v390_v14, 1 }
 0x218   :  { %v392_v46 = vadd.f32 %v391_v13, %v390_v14 }
 0x21a   :  { %394 = vst.msk [vmem:[#allocation7 + $0x8] sm:$0xff] %vm56_vm0, %v392_v46 }
 0x21b   :  { %541 = shalt.err (!%p538_p6)
}
 0x21c   :  { %s542_s15 = scalar_lea.hbm %s727_s3, 256 }
 0x21d   :  { %p543_p7 = scmp.ne.s32.totalorder %s727_s3, %s542_s15  ;;  %p546_p8 = scmp.lt.u32.totalorder %s542_s15, %s727_s3 }
 0x21f   :  { %p548_p9 = pnand %p546_p8, %p543_p7 }
 0x221   :  { %551 = shalt.err (!%p548_p9)
}
 0x222   :  { %406 = dma.vmem_to_hbm [thread:$0]  %s401_s11, 256, %s727_s3, [#allocation4], %s559_s22, %s559_s22, %s560_s23  }
 0x223   :  { %556 = dma.done.wait [#allocation4], 256  }
 0x224   :  { %557 = vsyncadd [#allocation4], 4294967040 }
 0x225   :  { %410 = vsyncpa [#allocation3], 1 }
 0x226   :  { %411 = vsyncpa [#allocation6], 1 }
 0x227   :  { %412 = vsyncpa [#allocation4], 1 }

</bundles_post_ra>
